<compile_context>
chip_gen: v7x
topology: tpu7x:2x2x1
jax: 0.10.0
libtpu: 0.0.40
codegen_flags: <defaults>
</compile_context>

<pallas_src>
import functools

import jax
import jax.numpy as jnp
from jax import lax
from jax.experimental import pallas as pl
from jax.experimental.pallas import tpu as pltpu


def _round_up(x, d):
    return (x + d - 1) // d * d


def downsample_kernel(xq_ref, w_ref, bias_ref, out_ref, *, ho, wo, h, w, cin, cout):
    """Fused 3x3/s2 conv (+folded BN, ReLU) and 3x3/s2 max-pool for one image.

    xq_ref  : (Ho+1, 2, Wo+1, 2*Cin) parity-grouped zero-padded NHWC image:
              xq[qh, sh, qw, sw*Cin + c] == padded_img[2*qh + sh, 2*qw + sw, c]
    w_ref   : (9, Cin, Cout)  conv weights (kh-major) with BN scale folded in
    bias_ref: (1, Cout)       folded BN bias
    out_ref : (1, Ho*Wo, Cout+Cin)  [..., :Cout]=ReLU(conv), [..., Cout:]=maxpool
    """
    m = ho * wo
    acc = jnp.zeros((m, cout), jnp.float32)
    pool = jnp.full((m, cin), -jnp.inf, jnp.float32)

    # Output-pixel coordinates; only used for the max-pool border mask
    # (MaxPool2d pads with -inf, while the image itself is zero-padded for conv).
    oh_i = lax.broadcasted_iota(jnp.int32, (ho, wo, 1), 0)
    ow_i = lax.broadcasted_iota(jnp.int32, (ho, wo, 1), 1)

    for kh in range(3):
        dh, sh = kh // 2, kh % 2
        # Padded row index of this tap is r = 2*oh + kh; rows 0 and > h are padding.
        row_all_valid = (kh >= 1) and (2 * (ho - 1) + kh <= h)
        for kw in range(3):
            dw, sw = kw // 2, kw % 2
            col_all_valid = (kw >= 1) and (2 * (wo - 1) + kw <= w)

            # Contiguous static slice: tap[oh, ow, c] = padded_img[2*oh+kh, 2*ow+kw, c]
            tap = xq_ref[dh:dh + ho, sh, dw:dw + wo, sw * cin:(sw + 1) * cin]
            tap2 = tap.reshape(m, cin)          # layout no-op (wo is a multiple of 8)

            # --- branch1: conv accumulates over the 9 taps on the MXU ---
            acc = acc + jnp.dot(tap2, w_ref[kh * 3 + kw],
                                preferred_element_type=jnp.float32)

            # --- branch2: max-pool; mask taps that fall outside the image ---
            if row_all_valid and col_all_valid:
                tap_m = tap2
            else:
                valid = None
                if not row_all_valid:
                    r = 2 * oh_i + kh
                    valid = (r >= 1) & (r <= h)
                if not col_all_valid:
                    c = 2 * ow_i + kw
                    cv = (c >= 1) & (c <= w)
                    valid = cv if valid is None else (valid & cv)
                tap_m = jnp.where(valid, tap, -jnp.inf).reshape(m, cin)
            pool = jnp.maximum(pool, tap_m)

    conv = jnp.maximum(acc + bias_ref[...], 0.0)
    out_ref[0, :, 0:cout] = conv.astype(out_ref.dtype)
    out_ref[0, :, cout:cout + cin] = pool.astype(out_ref.dtype)


@functools.partial(jax.jit, static_argnames=("eps",))
def downsample_forward(x_nchw, conv_w, gamma, beta, running_mean, running_var,
                       eps=1e-3):
    """Equivalent of Downsample.forward (inference-mode BatchNorm)."""
    n, cin, h, w = x_nchw.shape
    cout = conv_w.shape[0]
    ho = (h - 1) // 2 + 1                  # = (h + 2*1 - 3)//2 + 1
    wo = (w - 1) // 2 + 1
    wo_t = _round_up(wo, 8)                # padded output width (no-op for the demo)
    hq, wq = ho + 1, wo_t + 1
    hp, wp = 2 * hq, 2 * wq                # padded input extents (>= h+2, w+2)

    # NCHW -> NHWC, zero-pad 1px top/left + parity remainder bottom/right.
    x_nhwc = jnp.transpose(x_nchw, (0, 2, 3, 1)).astype(jnp.float32)
    xp = jnp.pad(x_nhwc, ((0, 0), (1, hp - h - 1), (1, wp - w - 1), (0, 0)))
    # Parity regrouping: pure metadata reshape, no data movement.  The kernel
    # reads the padded image directly — no im2col patches, no mask tensor.
    xq = xp.reshape(n * hq, 2, wq, 2 * cin)

    # Fold BatchNorm into the conv weights / bias.
    scale = gamma / jnp.sqrt(running_var + eps)
    w9 = (jnp.transpose(conv_w, (2, 3, 1, 0)).reshape(9, cin, cout)
          * scale[None, None, :]).astype(jnp.float32)
    bias = (beta - running_mean * scale).reshape(1, cout).astype(jnp.float32)

    m = ho * wo_t
    ctot = cout + cin
    kernel = functools.partial(downsample_kernel, ho=ho, wo=wo_t, h=h, w=w,
                               cin=cin, cout=cout)

    # VMEM budget: double-buffered image + output blocks plus resident weights.
    in_bytes = hq * 2 * wq * 2 * cin * 4
    out_bytes = m * ctot * 4
    w_bytes = (9 * cin * cout + cout) * 4
    footprint = 2 * (in_bytes + out_bytes) + w_bytes
    try:
        vmem_cap = pltpu.get_tpu_info().vmem_capacity_bytes   # 64 MiB/TC v7x, 128 MiB v5e/v6e
    except Exception:
        vmem_cap = 64 * 1024 * 1024
    vmem_limit = int(min(vmem_cap * 7 // 8, max(32 * 1024 * 1024, 4 * footprint)))

    cost = pl.CostEstimate(
        flops=2 * n * m * 9 * cin * cout + 10 * n * m * cin + 2 * n * m * cout,
        transcendentals=0,
        bytes_accessed=4 * (n * hq * 2 * wq * 2 * cin + 9 * cin * cout + cout
                            + n * m * ctot),
    )

    out3d = pl.pallas_call(
        kernel,
        out_shape=jax.ShapeDtypeStruct((n, m, ctot), jnp.float32),
        grid_spec=pltpu.PrefetchScalarGridSpec(
            num_scalar_prefetch=0,
            grid=(n,),                                       # one image per step; >=2 steps feeds both v7x TCs
            in_specs=[
                pl.BlockSpec((hq, 2, wq, 2 * cin), lambda b: (b, 0, 0, 0)),  # padded image (tiled by batch)
                pl.BlockSpec((9, cin, cout), lambda b: (0, 0, 0)),           # weights: VMEM-resident
                pl.BlockSpec((1, cout), lambda b: (0, 0)),                   # bias:    VMEM-resident
            ],
            out_specs=pl.BlockSpec((1, m, ctot), lambda b: (b, 0, 0)),       # fused conv || pool block
        ),
        compiler_params=pltpu.CompilerParams(
            dimension_semantics=("parallel",),
            vmem_limit_bytes=vmem_limit,
        ),
        cost_estimate=cost,
    )(xq, w9, bias)

    out_nhwc = out3d.reshape(n, ho, wo_t, ctot)[:, :, :wo, :]
    return jnp.transpose(out_nhwc, (0, 3, 1, 2))


def _reference(x_nchw, conv_w, gamma, beta, running_mean, running_var, eps=1e-3):
    conv = jax.lax.conv_general_dilated(
        x_nchw, conv_w, window_strides=(2, 2), padding=((1, 1), (1, 1)),
        dimension_numbers=("NCHW", "OIHW", "NCHW"))
    scale = gamma / jnp.sqrt(running_var + eps)
    bias = beta - running_mean * scale
    b1 = jnp.maximum(conv * scale[None, :, None, None] + bias[None, :, None, None], 0.0)
    b2 = jax.lax.reduce_window(
        x_nchw, -jnp.inf, jax.lax.max,
        window_dimensions=(1, 1, 3, 3), window_strides=(1, 1, 2, 2),
        padding=((0, 0), (0, 0), (1, 1), (1, 1)))
    return jnp.concatenate([b1, b2], axis=1)


if __name__ == "__main__":
    key = jax.random.PRNGKey(0)
    k_x, k_w, k_g, k_b, k_m, k_v = jax.random.split(key, 6)

    N, C_IN, H, W = 2, 4, 16, 16
    CH3X3 = 8

    x = jax.random.normal(k_x, (N, C_IN, H, W), dtype=jnp.float32)
    conv_w = 0.1 * jax.random.normal(k_w, (CH3X3, C_IN, 3, 3), dtype=jnp.float32)
    gamma = 1.0 + 0.1 * jax.random.normal(k_g, (CH3X3,), dtype=jnp.float32)
    beta = 0.1 * jax.random.normal(k_b, (CH3X3,), dtype=jnp.float32)
    running_mean = 0.1 * jax.random.normal(k_m, (CH3X3,), dtype=jnp.float32)
    running_var = 0.5 + jnp.abs(jax.random.normal(k_v, (CH3X3,), dtype=jnp.float32))

    out = downsample_forward(x, conv_w, gamma, beta, running_mean, running_var)
    out = jax.block_until_ready(out)

    ref = _reference(x, conv_w, gamma, beta, running_mean, running_var)
    assert out.shape == (N, CH3X3 + C_IN, H // 2, W // 2), out.shape
    assert jnp.allclose(out, ref, atol=1e-4, rtol=1e-4), float(jnp.max(jnp.abs(out - ref)))

    print("KERNEL_OK")
</pallas_src>

<mosaic_0001>
module attributes {stable_mosaic.version = 11 : i64} {
  func.func @downsample_kernel(%arg0: i32, %arg1: memref<9x2x9x8xf32, #tpu.memory_space<vmem>>, %arg2: memref<9x4x8xf32, #tpu.memory_space<vmem>>, %arg3: memref<1x8xf32, #tpu.memory_space<vmem>>, %arg4: memref<1x64x12xf32, #tpu.memory_space<vmem>>) attributes {dimension_semantics = [#tpu.dimension_semantics<parallel>], iteration_bounds = array<i64: 2>, scalar_prefetch = 0 : i64, scratch_operands = 0 : i64, tpu.core_type = #tpu.core_type<tc>, window_params = [{transform_indices = @transform_0, window_bounds = array<i64: 9, 2, 9, 8>}, {pipeline_mode = #tpu.pipeline_mode<synchronous>, transform_indices = @transform_1, window_bounds = array<i64: 9, 4, 8>}, {pipeline_mode = #tpu.pipeline_mode<synchronous>, transform_indices = @transform_2, window_bounds = array<i64: 1, 8>}, {transform_indices = @transform_3, window_bounds = array<i64: 1, 64, 12>}]} {
    %cst = arith.constant 0.000000e+00 : f32
    %0 = vector.broadcast %cst : f32 to vector<64x8xf32>
    %cst_0 = arith.constant 0xFF800000 : f32
    %1 = vector.broadcast %cst_0 : f32 to vector<64x4xf32>
    %2 = tpu.iota {dimensions = array<i32: 0>} : vector<8x8x1xi32>
    %3 = tpu.iota {dimensions = array<i32: 1>} : vector<8x8x1xi32>
    %c0 = arith.constant 0 : index
    %c0_1 = arith.constant 0 : index
    %c0_2 = arith.constant 0 : index
    %c0_3 = arith.constant 0 : index
    %4 = vector.load %arg1[%c0, %c0_1, %c0_2, %c0_3] : memref<9x2x9x8xf32, #tpu.memory_space<vmem>>, vector<8x1x8x4xf32>
    %5 = vector.shape_cast %4 : vector<8x1x8x4xf32> to vector<8x8x4xf32>
    %6 = vector.shape_cast %5 : vector<8x8x4xf32> to vector<64x4xf32>
    %c0_4 = arith.constant 0 : index
    %c0_5 = arith.constant 0 : index
    %c0_6 = arith.constant 0 : index
    %7 = vector.load %arg2[%c0_4, %c0_5, %c0_6] : memref<9x4x8xf32, #tpu.memory_space<vmem>>, vector<1x4x8xf32>
    %8 = vector.shape_cast %7 : vector<1x4x8xf32> to vector<4x8xf32>
    %cst_7 = arith.constant dense<0.000000e+00> : vector<64x8xf32>
    %9 = tpu.matmul %6, %8, %cst_7 {dimension_numbers = #tpu.dot_dimension_numbers<[1], [0], [0], [1], [0, 0, 1, 1], [], []>} : vector<64x4xf32>, vector<4x8xf32>, vector<64x8xf32> -> vector<64x8xf32>
    %10 = arith.addf %0, %9 : vector<64x8xf32>
    %c2_i32 = arith.constant 2 : i32
    %11 = vector.broadcast %c2_i32 : i32 to vector<8x8x1xi32>
    %12 = arith.muli %11, %2 : vector<8x8x1xi32>
    %c0_i32 = arith.constant 0 : i32
    %13 = vector.broadcast %c0_i32 : i32 to vector<8x8x1xi32>
    %14 = arith.addi %12, %13 : vector<8x8x1xi32>
    %c1_i32 = arith.constant 1 : i32
    %15 = vector.broadcast %c1_i32 : i32 to vector<8x8x1xi32>
    %16 = arith.cmpi sge, %14, %15 : vector<8x8x1xi32>
    %c16_i32 = arith.constant 16 : i32
    %17 = vector.broadcast %c16_i32 : i32 to vector<8x8x1xi32>
    %18 = arith.cmpi sle, %14, %17 : vector<8x8x1xi32>
    %19 = arith.andi %16, %18 : vector<8x8x1xi1>
    %c2_i32_8 = arith.constant 2 : i32
    %20 = vector.broadcast %c2_i32_8 : i32 to vector<8x8x1xi32>
    %21 = arith.muli %20, %3 : vector<8x8x1xi32>
    %c0_i32_9 = arith.constant 0 : i32
    %22 = vector.broadcast %c0_i32_9 : i32 to vector<8x8x1xi32>
    %23 = arith.addi %21, %22 : vector<8x8x1xi32>
    %c1_i32_10 = arith.constant 1 : i32
    %24 = vector.broadcast %c1_i32_10 : i32 to vector<8x8x1xi32>
    %25 = arith.cmpi sge, %23, %24 : vector<8x8x1xi32>
    %c16_i32_11 = arith.constant 16 : i32
    %26 = vector.broadcast %c16_i32_11 : i32 to vector<8x8x1xi32>
    %27 = arith.cmpi sle, %23, %26 : vector<8x8x1xi32>
    %28 = arith.andi %25, %27 : vector<8x8x1xi1>
    %29 = arith.andi %19, %28 : vector<8x8x1xi1>
    %cst_12 = arith.constant 0xFF800000 : f32
    %30 = vector.shape_cast %29 : vector<8x8x1xi1> to vector<8x8x1xi1>
    %31 = vector.broadcast %30 : vector<8x8x1xi1> to vector<8x8x4xi1>
    %32 = vector.broadcast %cst_12 : f32 to vector<8x8x4xf32>
    %33 = arith.select %31, %5, %32 : vector<8x8x4xi1>, vector<8x8x4xf32>
    %34 = vector.shape_cast %33 : vector<8x8x4xf32> to vector<64x4xf32>
    %35 = arith.maximumf %1, %34 : vector<64x4xf32>
    %c0_13 = arith.constant 0 : index
    %c0_14 = arith.constant 0 : index
    %c0_15 = arith.constant 0 : index
    %c4 = arith.constant 4 : index
    %36 = vector.load %arg1[%c0_13, %c0_14, %c0_15, %c4] : memref<9x2x9x8xf32, #tpu.memory_space<vmem>>, vector<8x1x8x4xf32>
    %37 = vector.shape_cast %36 : vector<8x1x8x4xf32> to vector<8x8x4xf32>
    %38 = vector.shape_cast %37 : vector<8x8x4xf32> to vector<64x4xf32>
    %c1 = arith.constant 1 : index
    %c0_16 = arith.constant 0 : index
    %c0_17 = arith.constant 0 : index
    %39 = vector.load %arg2[%c1, %c0_16, %c0_17] : memref<9x4x8xf32, #tpu.memory_space<vmem>>, vector<1x4x8xf32>
    %40 = vector.shape_cast %39 : vector<1x4x8xf32> to vector<4x8xf32>
    %cst_18 = arith.constant dense<0.000000e+00> : vector<64x8xf32>
    %41 = tpu.matmul %38, %40, %cst_18 {dimension_numbers = #tpu.dot_dimension_numbers<[1], [0], [0], [1], [0, 0, 1, 1], [], []>} : vector<64x4xf32>, vector<4x8xf32>, vector<64x8xf32> -> vector<64x8xf32>
    %42 = arith.addf %10, %41 : vector<64x8xf32>
    %c2_i32_19 = arith.constant 2 : i32
    %43 = vector.broadcast %c2_i32_19 : i32 to vector<8x8x1xi32>
    %44 = arith.muli %43, %2 : vector<8x8x1xi32>
    %c0_i32_20 = arith.constant 0 : i32
    %45 = vector.broadcast %c0_i32_20 : i32 to vector<8x8x1xi32>
    %46 = arith.addi %44, %45 : vector<8x8x1xi32>
    %c1_i32_21 = arith.constant 1 : i32
    %47 = vector.broadcast %c1_i32_21 : i32 to vector<8x8x1xi32>
    %48 = arith.cmpi sge, %46, %47 : vector<8x8x1xi32>
    %c16_i32_22 = arith.constant 16 : i32
    %49 = vector.broadcast %c16_i32_22 : i32 to vector<8x8x1xi32>
    %50 = arith.cmpi sle, %46, %49 : vector<8x8x1xi32>
    %51 = arith.andi %48, %50 : vector<8x8x1xi1>
    %cst_23 = arith.constant 0xFF800000 : f32
    %52 = vector.shape_cast %51 : vector<8x8x1xi1> to vector<8x8x1xi1>
    %53 = vector.broadcast %52 : vector<8x8x1xi1> to vector<8x8x4xi1>
    %54 = vector.broadcast %cst_23 : f32 to vector<8x8x4xf32>
    %55 = arith.select %53, %37, %54 : vector<8x8x4xi1>, vector<8x8x4xf32>
    %56 = vector.shape_cast %55 : vector<8x8x4xf32> to vector<64x4xf32>
    %57 = arith.maximumf %35, %56 : vector<64x4xf32>
    %c0_24 = arith.constant 0 : index
    %c0_25 = arith.constant 0 : index
    %c1_26 = arith.constant 1 : index
    %c0_27 = arith.constant 0 : index
    %58 = vector.load %arg1[%c0_24, %c0_25, %c1_26, %c0_27] : memref<9x2x9x8xf32, #tpu.memory_space<vmem>>, vector<8x1x8x4xf32>
    %59 = vector.shape_cast %58 : vector<8x1x8x4xf32> to vector<8x8x4xf32>
    %60 = vector.shape_cast %59 : vector<8x8x4xf32> to vector<64x4xf32>
    %c2 = arith.constant 2 : index
    %c0_28 = arith.constant 0 : index
    %c0_29 = arith.constant 0 : index
    %61 = vector.load %arg2[%c2, %c0_28, %c0_29] : memref<9x4x8xf32, #tpu.memory_space<vmem>>, vector<1x4x8xf32>
    %62 = vector.shape_cast %61 : vector<1x4x8xf32> to vector<4x8xf32>
    %cst_30 = arith.constant dense<0.000000e+00> : vector<64x8xf32>
    %63 = tpu.matmul %60, %62, %cst_30 {dimension_numbers = #tpu.dot_dimension_numbers<[1], [0], [0], [1], [0, 0, 1, 1], [], []>} : vector<64x4xf32>, vector<4x8xf32>, vector<64x8xf32> -> vector<64x8xf32>
    %64 = arith.addf %42, %63 : vector<64x8xf32>
    %c2_i32_31 = arith.constant 2 : i32
    %65 = vector.broadcast %c2_i32_31 : i32 to vector<8x8x1xi32>
    %66 = arith.muli %65, %2 : vector<8x8x1xi32>
    %c0_i32_32 = arith.constant 0 : i32
    %67 = vector.broadcast %c0_i32_32 : i32 to vector<8x8x1xi32>
    %68 = arith.addi %66, %67 : vector<8x8x1xi32>
    %c1_i32_33 = arith.constant 1 : i32
    %69 = vector.broadcast %c1_i32_33 : i32 to vector<8x8x1xi32>
    %70 = arith.cmpi sge, %68, %69 : vector<8x8x1xi32>
    %c16_i32_34 = arith.constant 16 : i32
    %71 = vector.broadcast %c16_i32_34 : i32 to vector<8x8x1xi32>
    %72 = arith.cmpi sle, %68, %71 : vector<8x8x1xi32>
    %73 = arith.andi %70, %72 : vector<8x8x1xi1>
    %cst_35 = arith.constant 0xFF800000 : f32
    %74 = vector.shape_cast %73 : vector<8x8x1xi1> to vector<8x8x1xi1>
    %75 = vector.broadcast %74 : vector<8x8x1xi1> to vector<8x8x4xi1>
    %76 = vector.broadcast %cst_35 : f32 to vector<8x8x4xf32>
    %77 = arith.select %75, %59, %76 : vector<8x8x4xi1>, vector<8x8x4xf32>
    %78 = vector.shape_cast %77 : vector<8x8x4xf32> to vector<64x4xf32>
    %79 = arith.maximumf %57, %78 : vector<64x4xf32>
    %c0_36 = arith.constant 0 : index
    %c1_37 = arith.constant 1 : index
    %c0_38 = arith.constant 0 : index
    %c0_39 = arith.constant 0 : index
    %80 = vector.load %arg1[%c0_36, %c1_37, %c0_38, %c0_39] : memref<9x2x9x8xf32, #tpu.memory_space<vmem>>, vector<8x1x8x4xf32>
    %81 = vector.shape_cast %80 : vector<8x1x8x4xf32> to vector<8x8x4xf32>
    %82 = vector.shape_cast %81 : vector<8x8x4xf32> to vector<64x4xf32>
    %c3 = arith.constant 3 : index
    %c0_40 = arith.constant 0 : index
    %c0_41 = arith.constant 0 : index
    %83 = vector.load %arg2[%c3, %c0_40, %c0_41] : memref<9x4x8xf32, #tpu.memory_space<vmem>>, vector<1x4x8xf32>
    %84 = vector.shape_cast %83 : vector<1x4x8xf32> to vector<4x8xf32>
    %cst_42 = arith.constant dense<0.000000e+00> : vector<64x8xf32>
    %85 = tpu.matmul %82, %84, %cst_42 {dimension_numbers = #tpu.dot_dimension_numbers<[1], [0], [0], [1], [0, 0, 1, 1], [], []>} : vector<64x4xf32>, vector<4x8xf32>, vector<64x8xf32> -> vector<64x8xf32>
    %86 = arith.addf %64, %85 : vector<64x8xf32>
    %c2_i32_43 = arith.constant 2 : i32
    %87 = vector.broadcast %c2_i32_43 : i32 to vector<8x8x1xi32>
    %88 = arith.muli %87, %3 : vector<8x8x1xi32>
    %c0_i32_44 = arith.constant 0 : i32
    %89 = vector.broadcast %c0_i32_44 : i32 to vector<8x8x1xi32>
    %90 = arith.addi %88, %89 : vector<8x8x1xi32>
    %c1_i32_45 = arith.constant 1 : i32
    %91 = vector.broadcast %c1_i32_45 : i32 to vector<8x8x1xi32>
    %92 = arith.cmpi sge, %90, %91 : vector<8x8x1xi32>
    %c16_i32_46 = arith.constant 16 : i32
    %93 = vector.broadcast %c16_i32_46 : i32 to vector<8x8x1xi32>
    %94 = arith.cmpi sle, %90, %93 : vector<8x8x1xi32>
    %95 = arith.andi %92, %94 : vector<8x8x1xi1>
    %cst_47 = arith.constant 0xFF800000 : f32
    %96 = vector.shape_cast %95 : vector<8x8x1xi1> to vector<8x8x1xi1>
    %97 = vector.broadcast %96 : vector<8x8x1xi1> to vector<8x8x4xi1>
    %98 = vector.broadcast %cst_47 : f32 to vector<8x8x4xf32>
    %99 = arith.select %97, %81, %98 : vector<8x8x4xi1>, vector<8x8x4xf32>
    %100 = vector.shape_cast %99 : vector<8x8x4xf32> to vector<64x4xf32>
    %101 = arith.maximumf %79, %100 : vector<64x4xf32>
    %c0_48 = arith.constant 0 : index
    %c1_49 = arith.constant 1 : index
    %c0_50 = arith.constant 0 : index
    %c4_51 = arith.constant 4 : index
    %102 = vector.load %arg1[%c0_48, %c1_49, %c0_50, %c4_51] : memref<9x2x9x8xf32, #tpu.memory_space<vmem>>, vector<8x1x8x4xf32>
    %103 = vector.shape_cast %102 : vector<8x1x8x4xf32> to vector<8x8x4xf32>
    %104 = vector.shape_cast %103 : vector<8x8x4xf32> to vector<64x4xf32>
    %c4_52 = arith.constant 4 : index
    %c0_53 = arith.constant 0 : index
    %c0_54 = arith.constant 0 : index
    %105 = vector.load %arg2[%c4_52, %c0_53, %c0_54] : memref<9x4x8xf32, #tpu.memory_space<vmem>>, vector<1x4x8xf32>
    %106 = vector.shape_cast %105 : vector<1x4x8xf32> to vector<4x8xf32>
    %cst_55 = arith.constant dense<0.000000e+00> : vector<64x8xf32>
    %107 = tpu.matmul %104, %106, %cst_55 {dimension_numbers = #tpu.dot_dimension_numbers<[1], [0], [0], [1], [0, 0, 1, 1], [], []>} : vector<64x4xf32>, vector<4x8xf32>, vector<64x8xf32> -> vector<64x8xf32>
    %108 = arith.addf %86, %107 : vector<64x8xf32>
    %109 = arith.maximumf %101, %104 : vector<64x4xf32>
    %c0_56 = arith.constant 0 : index
    %c1_57 = arith.constant 1 : index
    %c1_58 = arith.constant 1 : index
    %c0_59 = arith.constant 0 : index
    %110 = vector.load %arg1[%c0_56, %c1_57, %c1_58, %c0_59] : memref<9x2x9x8xf32, #tpu.memory_space<vmem>>, vector<8x1x8x4xf32>
    %111 = vector.shape_cast %110 : vector<8x1x8x4xf32> to vector<8x8x4xf32>
    %112 = vector.shape_cast %111 : vector<8x8x4xf32> to vector<64x4xf32>
    %c5 = arith.constant 5 : index
    %c0_60 = arith.constant 0 : index
    %c0_61 = arith.constant 0 : index
    %113 = vector.load %arg2[%c5, %c0_60, %c0_61] : memref<9x4x8xf32, #tpu.memory_space<vmem>>, vector<1x4x8xf32>
    %114 = vector.shape_cast %113 : vector<1x4x8xf32> to vector<4x8xf32>
    %cst_62 = arith.constant dense<0.000000e+00> : vector<64x8xf32>
    %115 = tpu.matmul %112, %114, %cst_62 {dimension_numbers = #tpu.dot_dimension_numbers<[1], [0], [0], [1], [0, 0, 1, 1], [], []>} : vector<64x4xf32>, vector<4x8xf32>, vector<64x8xf32> -> vector<64x8xf32>
    %116 = arith.addf %108, %115 : vector<64x8xf32>
    %117 = arith.maximumf %109, %112 : vector<64x4xf32>
    %c1_63 = arith.constant 1 : index
    %c0_64 = arith.constant 0 : index
    %c0_65 = arith.constant 0 : index
    %c0_66 = arith.constant 0 : index
    %118 = vector.load %arg1[%c1_63, %c0_64, %c0_65, %c0_66] : memref<9x2x9x8xf32, #tpu.memory_space<vmem>>, vector<8x1x8x4xf32>
    %119 = vector.shape_cast %118 : vector<8x1x8x4xf32> to vector<8x8x4xf32>
    %120 = vector.shape_cast %119 : vector<8x8x4xf32> to vector<64x4xf32>
    %c6 = arith.constant 6 : index
    %c0_67 = arith.constant 0 : index
    %c0_68 = arith.constant 0 : index
    %121 = vector.load %arg2[%c6, %c0_67, %c0_68] : memref<9x4x8xf32, #tpu.memory_space<vmem>>, vector<1x4x8xf32>
    %122 = vector.shape_cast %121 : vector<1x4x8xf32> to vector<4x8xf32>
    %cst_69 = arith.constant dense<0.000000e+00> : vector<64x8xf32>
    %123 = tpu.matmul %120, %122, %cst_69 {dimension_numbers = #tpu.dot_dimension_numbers<[1], [0], [0], [1], [0, 0, 1, 1], [], []>} : vector<64x4xf32>, vector<4x8xf32>, vector<64x8xf32> -> vector<64x8xf32>
    %124 = arith.addf %116, %123 : vector<64x8xf32>
    %c2_i32_70 = arith.constant 2 : i32
    %125 = vector.broadcast %c2_i32_70 : i32 to vector<8x8x1xi32>
    %126 = arith.muli %125, %3 : vector<8x8x1xi32>
    %c0_i32_71 = arith.constant 0 : i32
    %127 = vector.broadcast %c0_i32_71 : i32 to vector<8x8x1xi32>
    %128 = arith.addi %126, %127 : vector<8x8x1xi32>
    %c1_i32_72 = arith.constant 1 : i32
    %129 = vector.broadcast %c1_i32_72 : i32 to vector<8x8x1xi32>
    %130 = arith.cmpi sge, %128, %129 : vector<8x8x1xi32>
    %c16_i32_73 = arith.constant 16 : i32
    %131 = vector.broadcast %c16_i32_73 : i32 to vector<8x8x1xi32>
    %132 = arith.cmpi sle, %128, %131 : vector<8x8x1xi32>
    %133 = arith.andi %130, %132 : vector<8x8x1xi1>
    %cst_74 = arith.constant 0xFF800000 : f32
    %134 = vector.shape_cast %133 : vector<8x8x1xi1> to vector<8x8x1xi1>
    %135 = vector.broadcast %134 : vector<8x8x1xi1> to vector<8x8x4xi1>
    %136 = vector.broadcast %cst_74 : f32 to vector<8x8x4xf32>
    %137 = arith.select %135, %119, %136 : vector<8x8x4xi1>, vector<8x8x4xf32>
    %138 = vector.shape_cast %137 : vector<8x8x4xf32> to vector<64x4xf32>
    %139 = arith.maximumf %117, %138 : vector<64x4xf32>
    %c1_75 = arith.constant 1 : index
    %c0_76 = arith.constant 0 : index
    %c0_77 = arith.constant 0 : index
    %c4_78 = arith.constant 4 : index
    %140 = vector.load %arg1[%c1_75, %c0_76, %c0_77, %c4_78] : memref<9x2x9x8xf32, #tpu.memory_space<vmem>>, vector<8x1x8x4xf32>
    %141 = vector.shape_cast %140 : vector<8x1x8x4xf32> to vector<8x8x4xf32>
    %142 = vector.shape_cast %141 : vector<8x8x4xf32> to vector<64x4xf32>
    %c7 = arith.constant 7 : index
    %c0_79 = arith.constant 0 : index
    %c0_80 = arith.constant 0 : index
    %143 = vector.load %arg2[%c7, %c0_79, %c0_80] : memref<9x4x8xf32, #tpu.memory_space<vmem>>, vector<1x4x8xf32>
    %144 = vector.shape_cast %143 : vector<1x4x8xf32> to vector<4x8xf32>
    %cst_81 = arith.constant dense<0.000000e+00> : vector<64x8xf32>
    %145 = tpu.matmul %142, %144, %cst_81 {dimension_numbers = #tpu.dot_dimension_numbers<[1], [0], [0], [1], [0, 0, 1, 1], [], []>} : vector<64x4xf32>, vector<4x8xf32>, vector<64x8xf32> -> vector<64x8xf32>
    %146 = arith.addf %124, %145 : vector<64x8xf32>
    %147 = arith.maximumf %139, %142 : vector<64x4xf32>
    %c1_82 = arith.constant 1 : index
    %c0_83 = arith.constant 0 : index
    %c1_84 = arith.constant 1 : index
    %c0_85 = arith.constant 0 : index
    %148 = vector.load %arg1[%c1_82, %c0_83, %c1_84, %c0_85] : memref<9x2x9x8xf32, #tpu.memory_space<vmem>>, vector<8x1x8x4xf32>
    %149 = vector.shape_cast %148 : vector<8x1x8x4xf32> to vector<8x8x4xf32>
    %150 = vector.shape_cast %149 : vector<8x8x4xf32> to vector<64x4xf32>
    %c8 = arith.constant 8 : index
    %c0_86 = arith.constant 0 : index
    %c0_87 = arith.constant 0 : index
    %151 = vector.load %arg2[%c8, %c0_86, %c0_87] : memref<9x4x8xf32, #tpu.memory_space<vmem>>, vector<1x4x8xf32>
    %152 = vector.shape_cast %151 : vector<1x4x8xf32> to vector<4x8xf32>
    %cst_88 = arith.constant dense<0.000000e+00> : vector<64x8xf32>
    %153 = tpu.matmul %150, %152, %cst_88 {dimension_numbers = #tpu.dot_dimension_numbers<[1], [0], [0], [1], [0, 0, 1, 1], [], []>} : vector<64x4xf32>, vector<4x8xf32>, vector<64x8xf32> -> vector<64x8xf32>
    %154 = arith.addf %146, %153 : vector<64x8xf32>
    %155 = arith.maximumf %147, %150 : vector<64x4xf32>
    %c0_89 = arith.constant 0 : index
    %c0_90 = arith.constant 0 : index
    %156 = vector.load %arg3[%c0_89, %c0_90] : memref<1x8xf32, #tpu.memory_space<vmem>>, vector<1x8xf32>
    %157 = vector.broadcast %156 : vector<1x8xf32> to vector<64x8xf32>
    %158 = arith.addf %154, %157 : vector<64x8xf32>
    %cst_91 = arith.constant 0.000000e+00 : f32
    %159 = vector.broadcast %cst_91 : f32 to vector<64x8xf32>
    %160 = arith.maximumf %158, %159 : vector<64x8xf32>
    %c0_92 = arith.constant 0 : index
    %c0_93 = arith.constant 0 : index
    %c0_94 = arith.constant 0 : index
    %161 = vector.load %arg4[%c0_92, %c0_93, %c0_94] : memref<1x64x12xf32, #tpu.memory_space<vmem>>, vector<1x64x8xf32>
    %162 = vector.shape_cast %161 : vector<1x64x8xf32> to vector<64x8xf32>
    %163 = vector.shape_cast %160 : vector<64x8xf32> to vector<1x64x8xf32>
    tpu.vector_store %arg4[%c0_92, %c0_93, %c0_94], %163 {strides = array<i32>} : memref<1x64x12xf32, #tpu.memory_space<vmem>>, vector<1x64x8xf32>,
    %c0_95 = arith.constant 0 : index
    %c0_96 = arith.constant 0 : index
    %c8_97 = arith.constant 8 : index
    %164 = vector.load %arg4[%c0_95, %c0_96, %c8_97] : memref<1x64x12xf32, #tpu.memory_space<vmem>>, vector<1x64x4xf32>
    %165 = vector.shape_cast %164 : vector<1x64x4xf32> to vector<64x4xf32>
    %166 = vector.shape_cast %155 : vector<64x4xf32> to vector<1x64x4xf32>
    tpu.vector_store %arg4[%c0_95, %c0_96, %c8_97], %166 {strides = array<i32>} : memref<1x64x12xf32, #tpu.memory_space<vmem>>, vector<1x64x4xf32>,
    return
  }
  func.func @transform_0(%arg0: i32) -> (i32, i32, i32, i32) {
    %c0_i32 = arith.constant 0 : i32
    %c0_i32_0 = arith.constant 0 : i32
    %c0_i32_1 = arith.constant 0 : i32
    %c0_i32_2 = arith.constant 0 : i32
    return %arg0, %c0_i32, %c0_i32_0, %c0_i32_1 : i32, i32, i32, i32
  }
  func.func @transform_1(%arg0: i32) -> (i32, i32, i32) {
    %c0_i32 = arith.constant 0 : i32
    %c0_i32_0 = arith.constant 0 : i32
    %c0_i32_1 = arith.constant 0 : i32
    %c0_i32_2 = arith.constant 0 : i32
    return %c0_i32, %c0_i32_0, %c0_i32_1 : i32, i32, i32
  }
  func.func @transform_2(%arg0: i32) -> (i32, i32) {
    %c0_i32 = arith.constant 0 : i32
    %c0_i32_0 = arith.constant 0 : i32
    %c0_i32_1 = arith.constant 0 : i32
    return %c0_i32, %c0_i32_0 : i32, i32
  }
  func.func @transform_3(%arg0: i32) -> (i32, i32, i32) {
    %c0_i32 = arith.constant 0 : i32
    %c0_i32_0 = arith.constant 0 : i32
    %c0_i32_1 = arith.constant 0 : i32
    return %arg0, %c0_i32, %c0_i32_0 : i32, i32, i32
  }
}

</mosaic_0001>

<bundles_post_ra>
// kernel: downsample_forward.1
= control target key start
LH: loop header
LB: loop body
LE: loop exit
PB: predicated region body
PF: predicated region fallthrough
CT: control target
= control target key end

     0   :  { %8 = vsyncpa [#allocation3], 0  ;;  %s3028_s0 = inlined_call_operand.vmem [shape: f32[18,2,9,8], index: 0, kind: input, shape index: {}]   ;;  %s3029_s1 = inlined_call_operand.vmem [shape: f32[9,4,8], index: 1, kind: input, shape index: {}]   ;;  %s3030_s2 = inlined_call_operand.vmem [shape: f32[1,8], index: 2, kind: input, shape index: {}]   ;;  %s3031_s3 = inlined_call_operand.hbm [shape: f32[2,64,12], index: 3, kind: output, shape index: {}]  }
   0x1   :  { %10 = vsyncpa [#allocation3 + $0x1], 0  ;;  %s2367_s12 = smov 0   ;;  %s2369_s13 = smov 0  }
   0x2   :  { %s2371_s14 = smov 0   ;;  %s2373_s15 = smov 0  }
   0x3 LB: > { %s2388_s16 = sadd.s32 4294967295, %s2340_s15   ;;  %s1826_s17 = sadd.s32 4294967294, %s2340_s15   ;;  %s2340_s15 = sphi %s2373_s15, %s3042_s15   ;;  %s2336_s14 = sphi %s2371_s14, %s3041_s14   ;;  %s2332_s13 = sphi %s2369_s13, %s3040_s13   ;;  %s2328_s12 = sphi %s2367_s12, %s3039_s12  }
   0x4   : > { %s2392_s18 = sadd.s32 1, %s2340_s15   ;;  %s91_s19 = sadd.s32 1, %s2336_s14 }
   0x5   : > { %s88_s20 = ssub.s32 %s2340_s15, %s2392_s18  ;;  %p101_p0 = scmp.ne.s32.totalorder %s2336_s14, %s2332_s13 }
   0x6   : > { %p89_p1 = scmp.eq.s32.totalorder %s88_s20, 0  ;;  %p102_p2 = scmp.eq.s32.totalorder %s2388_s16, 1 }
   0x7   : > { %p107_p3 = scmp.ne.s32.totalorder %s2332_s13, %s2328_s12  ;;  %p108_p4 = scmp.eq.s32.totalorder %s1826_s17, 1 }
   0x8   : > { %s2403_s21 = scalar_select %p89_p1, %s2336_s14, %s91_s19  }
   0x9   : > { %p2405_p5 = por %p102_p2, %p101_p0  ;;  %p2409_p6 = por %p108_p4, %p107_p3 }
   0xa   : > { %p1829_p7 = scmp.ge.s32.totalorder %s2340_s15, 1  ;;  %p142_p8 = scmp.lt.s32.totalorder %s2340_s15, 3 }
   0xc   : > { %p143_p9 = pnand %p1829_p7, %p142_p8 }
   0xe   : > { %146 = sbr.rel (%p143_p9) target bundleno = 458 (0x1ca), region = 32 }
  0x15   : > { %s167_s24 = smul.u32 9, %s2388_s16  ;;  %v1833_v0 = vld [vmem:[%s3029_s1 + $0x4] sm:$0xf]  ;;  %vm246_vm0 = vcmask 1043456   ;;  %v2423_v1 = vld [vmem:[%s3029_s1 + $0x10] sm:$0xf]  ;;  %v174_v48 = vlaneseq }
  0x16   : > { %2043 = vmatprep.subr.msk.mxu1 %vm246_vm0, %v1833_v0  ;;  %2099 = vmatprep.subr.msk.mxu0 %vm246_vm0, %v2423_v1  ;;  %v2433_v2 = vld [vmem:[%s3029_s1] sm:$0xf]  ;;  %v2438_v3 = vld [vmem:[%s3029_s1 + $0x14] sm:$0xf]  ;;  %s2342_s10 = smov 124   ;;  %v2343_v21 = vmov -inf  }
  0x17   : > { %p168_p10 = scmp.lt.s32.totalorder %s167_s24, 17  ;;  %2044 = vmatpush3.msk.msra.mxu1 %vm246_vm0, %v1833_v0  ;;  %2100 = vmatpush3.msk.msra.mxu0 %vm246_vm0, %v2423_v1  ;;  %vm229_vm1 = vcmask 31744   ;;  %v1852_v24 = vld [vmem:[%s3029_s1 + $0x8] sm:$0xf]  ;;  %v1916_v27 = vld [vmem:[%s3029_s1 + $0x18] sm:$0xf] }
  0x18   : > { %2057 = vmatprep.subr.msk.mxu1 %vm246_vm0, %v2433_v2  ;;  %2113 = vmatprep.subr.msk.mxu0 %vm246_vm0, %v2438_v3  ;;  %v1926_v37 = vld [vmem:[%s3029_s1 + $0x1c] sm:$0xf]  ;;  %v1870_v46 = vld [vmem:[%s3029_s1 + $0xc] sm:$0xf]  ;;  %v175_v51 = vshrl.u32 %v174_v48, 7  ;;  %s2344_s30 = smov 8  }
  0x19   : > { %s3044_s24 = smov (!%p168_p10, %s167_s24), 17  ;;  %v1944_v54 = vld [vmem:[%s3029_s1 + $0x20] sm:$0xf]  ;;  %s164_s4 = sand.u32 1, %s2332_s13   ;;  %vm1700_vm5 = vcmask 64512   ;;  %vm1741_vm6 = vcmask 97344  }
  0x1a   : > { %s1960_s6 = sshll.u32 %s3044_s24, 5  ;;  %v185_v55 = vmul.u32 2, %v175_v51  ;;  %s1830_s7 = sshll.u32 %s164_s4, 6 }
  0x1b   : > { %s2447_s9 = scalar_lea.vmem %s3028_s0, %s1960_s6  ;;  %s2941_s8 = scalar_lea.vmem [#allocation2], %s1830_s7 }
  0x1c   : > { %v2450_v4 = vld [vmem:[%s2447_s9 + $0x20] sm:$0xff]  ;;  %v2460_v6 = vld [vmem:[%s2447_s9 + $0x30] sm:$0xff]  ;;  %vm186_vm2 = vcmp.ge.s32.totalorder %v185_v55, 1  ;;  %vm187_vm3 = vcmp.le.s32.totalorder %v185_v55, 16  ;;  %s2345_s24 = smov [#allocation2]  }
  0x1d   : > { %v2453_v5 = vld [vmem:[%s2447_s9] sm:$0xff]  ;;  %215 = vrot.lane.b32.xlu1 %v2450_v4, %s2342_s10  ;;  %v2463_v7 = vld [vmem:[%s2447_s9 + $0x10] sm:$0xff]  ;;  %vm2714_vm4 = vmand %vm186_vm2, %vm187_vm3  ;;  %s2282_s25 = sshll.u32 %s2345_s24, 4  ;;  %s2283_s25 = int_to_ptr.vmem [resolvable:$false] %s2282_s25 }
  0x1e   : > { %213 = vrot.lane.b32.xlu0 %v2453_v5, %s2342_s10  ;;  %v2470_v8 = vld [vmem:[%s2447_s9 + $0x50] sm:$0xff]  ;;  %v2473_v9 = vld [vmem:[%s2447_s9 + $0x40] sm:$0xff]  ;;  %s2284_s26 = scalar_lea.vmem %s2283_s25, 2048 }
  0x1f   : > { %v2480_v10 = vld [vmem:[%s2447_s9 + $0x70] sm:$0xff]  ;;  %v2483_v11 = vld [vmem:[%s2447_s9 + $0x60] sm:$0xff] }
  0x20   : > { %v2490_v12 = vld [vmem:[%s2447_s9 + $0xa0] sm:$0xff]  ;;  %v2529_v17 = vld [vmem:[%s2447_s9 + $0xb0] sm:$0xff] }
  0x21   : > { %866 = vrot.lane.b32.xlu1 %v2460_v6, %s2342_s10  ;;  %v2493_v13 = vld [vmem:[%s2447_s9 + $0x80] sm:$0xff]  ;;  %v2532_v18 = vld [vmem:[%s2447_s9 + $0x90] sm:$0xff] }
  0x22   : > { %864 = vrot.lane.b32.xlu0 %v2463_v7, %s2342_s10  ;;  %v2500_v14 = vld [vmem:[%s2447_s9 + $0xe0] sm:$0xff]  ;;  %v2539_v19 = vld [vmem:[%s2447_s9 + $0xf0] sm:$0xff] }
  0x23   : > { %v2503_v15 = vld [vmem:[%s2447_s9 + $0xc0] sm:$0xff]  ;;  %v2542_v20 = vld [vmem:[%s2447_s9 + $0xd0] sm:$0xff] }
  0x24   : > { %v2522_v16 = vld [vmem:[%s2447_s9 + $0x100] sm:$0xff]  ;;  %v2591_v30 = vld [vmem:[%s2447_s9 + $0x11] sm:$0xff] }
  0x25   : > { %868 = vrot.lane.b32.xlu1 %v2470_v8, %s2342_s10  ;;  %v2601_v33 = vld [vmem:[%s2447_s9 + $0x31] sm:$0xff]  ;;  %v527_v58 = vld [vmem:[%s2447_s9 + $0x1] sm:$0xff] }
  0x26   : > { %217 = vrot.lane.b32.xlu0 %v2473_v9, %s2342_s10  ;;  %v2604_v36 = vld [vmem:[%s2447_s9 + $0x51] sm:$0xff]  ;;  %v2699_v59 = vld [vmem:[%s2447_s9 + $0x21] sm:$0xff] }
  0x27   : > { %v2615_v38 = vld [vmem:[%s2447_s9 + $0x71] sm:$0xff]  ;;  %v2706_v62 = vld [vmem:[%s2447_s9 + $0x41] sm:$0xff] }
  0x28   : > { %v2620_v39 = vld [vmem:[%s2447_s9 + $0x91] sm:$0xff]  ;;  %v2722_v0 = vld [vmem:[%s2447_s9 + $0x61] sm:$0xff] }
  0x29   : > { %870 = vrot.lane.b32.xlu1 %v2480_v10, %s2342_s10  ;;  %v2630_v42 = vld [vmem:[%s2447_s9 + $0xb1] sm:$0xff] }
  0x2a   : > { %219 = vrot.lane.b32.xlu0 %v2483_v11, %s2342_s10  ;;  %v2635_v43 = vld [vmem:[%s2447_s9 + $0xd1] sm:$0xff] }
  0x2b   : > { %v2651_v47 = vld [vmem:[%s2447_s9 + $0xf1] sm:$0xff] }
  0x2d   : > { %223 = vrot.lane.b32.xlu1 %v2490_v12, %s2342_s10 }
  0x2e   : > { %221 = vrot.lane.b32.xlu0 %v2493_v13, %s2342_s10 }
  0x31   : > { %227 = vrot.lane.b32.xlu1 %v2500_v14, %s2342_s10 }
  0x32   : > { %225 = vrot.lane.b32.xlu0 %v2503_v15, %s2342_s10 }
  0x35   : > { %1357 = vrot.lane.b32.xlu1 %v2473_v9, %s2342_s10 }
  0x36   : > { %1355 = vrot.lane.b32.xlu0 %v2450_v4, %s2342_s10 }
  0x39   : > { %1361 = vrot.lane.b32.xlu1 %v2493_v13, %s2342_s10 }
  0x3a   : > { %1359 = vrot.lane.b32.xlu0 %v2483_v11, %s2342_s10 }
  0x3d   : > { %1365 = vrot.lane.b32.xlu1 %v2503_v15, %s2342_s10 }
  0x3e   : > { %1363 = vrot.lane.b32.xlu0 %v2490_v12, %s2342_s10 }
  0x41   : > { %1369 = vrot.lane.b32.xlu1 %v2522_v16, %s2342_s10 }
  0x42   : > { %1367 = vrot.lane.b32.xlu0 %v2500_v14, %s2342_s10 }
  0x45   : > { %874 = vrot.lane.b32.xlu1 %v2529_v17, %s2342_s10 }
  0x46   : > { %872 = vrot.lane.b32.xlu0 %v2532_v18, %s2342_s10 }
  0x49   : > { %878 = vrot.lane.b32.xlu1 %v2539_v19, %s2342_s10 }
  0x4a   : > { %876 = vrot.lane.b32.xlu0 %v2542_v20, %s2342_s10 }
  0x4d   : > { %499 = vrot.lane.b32.xlu1 %v2473_v9, %s2342_s10 }
  0x4e   : > { %497 = vrot.lane.b32.xlu0 %v2450_v4, %s2342_s10 }
  0x51   : > { %503 = vrot.lane.b32.xlu1 %v2493_v13, %s2342_s10 }
  0x52   : > { %501 = vrot.lane.b32.xlu0 %v2483_v11, %s2342_s10 }
  0x55   : > { %507 = vrot.lane.b32.xlu1 %v2503_v15, %s2342_s10 }
  0x56   : > { %505 = vrot.lane.b32.xlu0 %v2490_v12, %s2342_s10 }
  0x59   : > { %495 = vrot.lane.b32.xlu1 %v2343_v21, %s2342_s10  ;;  %v2738_v21 = vsel %vm2714_vm4, %v2473_v9, -inf }
  0x5a   : > { %509 = vrot.lane.b32.xlu0 %v2500_v14, %s2342_s10  ;;  %s1764_s10 = sshll.u32 %s2941_s8, 4  ;;  %s2976_s10 = int_to_ptr.vmem [resolvable:$true] %s1764_s10 }
  0x5b   : > { %s2278_s20 = scalar_lea.vmem %s2976_s10, 1024  ;;  %p2285_p0 = scmp.lt.s32.totalorder %s2976_s10, %s2283_s25 }
  0x5c   : > { %p2279_p11 = scmp.ne.s32.totalorder %s2976_s10, %s2278_s20  ;;  %p2286_p1 = scmp.lt.s32.totalorder %s2284_s26, %s2278_s20 }
  0x5e   : > { %p2280_p12 = pnand %p2279_p11, %p2405_p5  ;;  %p2287_p2 = por %p2286_p1, %p2285_p0 }
  0x60   : > { %p2281_p13 = pneg %p2280_p12 }
  0x62   : > { %p2288_p3 = pnand %p2287_p2, %p2281_p13 }
  0x8f   : > { %v216_v22 = vpop.permute.xlu1 %215 }
  0x90   : > { %v214_v23 = vpop.permute.xlu0 %213 }
  0x91   : > { %2045 = vmatprep.mubr.msk.f32.mxu1 %vm229_vm1, %v214_v23  ;;  %v2752_v23 = vld [vmem:[%s2447_s9 + $0xa1] sm:$0xff] }
  0x92   : > { %2046 = vmatmul.mubr.msk.f32.vlgmr.msra.gmra.mrb[0].mxu1 %vm229_vm1, %v216_v22  ;;  %v2743_v22 = vsel %vm2714_vm4, %v2450_v4, -inf }
  0x93   : > { %2058 = vmatpush3.msk.msra.mxu1 %vm246_vm0, %v2433_v2  ;;  %v2570_v25 = vpop.permute.xlu1 %866 }
  0x94   : > { %v2572_v26 = vpop.permute.xlu0 %864  ;;  %2071 = vmatprep.subr.msk.mxu1 %vm246_vm0, %v1852_v24 }
  0x95   : > { %2101 = vmatprep.mubr.msk.f32.mxu0 %vm229_vm1, %v2572_v26 }
  0x96   : > { %2102 = vmatmul.mubr.msk.f32.vlgmr.msra.gmra.mrb[0].mxu0 %vm229_vm1, %v2570_v25 }
  0x97   : > { %2114 = vmatpush3.msk.msra.mxu0 %vm246_vm0, %v2438_v3  ;;  %v2584_v28 = vpop.permute.xlu1 %868 }
  0x98   : > { %v218_v29 = vpop.permute.xlu0 %217  ;;  %2127 = vmatprep.subr.msk.mxu0 %vm246_vm0, %v1916_v27  ;;  %2104 = vmatprep.mubr.msk.f32.mxu0 %vm229_vm1, %v2584_v28 }
  0x99   : > { %2048 = vmatprep.mubr.msk.f32.mxu1 %vm229_vm1, %v218_v29 }
  0x9b   : > { %v2593_v31 = vpop.permute.xlu1 %870 }
  0x9c   : > { %v220_v32 = vpop.permute.xlu0 %219  ;;  %2105 = vmatmul.mubr.msk.f32.gmra.mrb[2].mxu0 %vm229_vm1, %v2593_v31 }
  0x9d   : > { %2049 = vmatmul.mubr.msk.f32.gmra.mrb[2].mxu1 %vm229_vm1, %v220_v32  ;;  %2115 = vmatprep.mubr.msk.f32.mxu0 %vm229_vm1, %v2591_v30  ;;  %v847_v32 = vsel %vm2714_vm4, %v2460_v6, -inf }
  0x9f   : > { %v224_v34 = vpop.permute.xlu1 %223 }
  0xa0   : > { %v222_v35 = vpop.permute.xlu0 %221  ;;  %2116 = vmatmul.mubr.msk.f32.vlgmr.msra.gmra.mrb[0].mxu0 %vm229_vm1, %v2601_v33 }
  0xa1   : > { %2051 = vmatprep.mubr.msk.f32.mxu1 %vm229_vm1, %v222_v35  ;;  %2128 = vmatpush3.msk.msra.mxu0 %vm246_vm0, %v1916_v27  ;;  %v2755_v27 = vld [vmem:[%s2447_s9 + $0xc1] sm:$0xff]  ;;  %v2770_v35 = vsel %vm2714_vm4, %v2493_v13, -inf }
  0xa2   : > { %2052 = vmatmul.mubr.msk.f32.gmra.mrb[4].mxu1 %vm229_vm1, %v224_v34  ;;  %2118 = vmatprep.mubr.msk.f32.mxu0 %vm229_vm1, %v2604_v36  ;;  %v848_v34 = vsel %vm2714_vm4, %v2470_v8, -inf }
  0xa3   : > { %2141 = vmatprep.subr.msk.mxu0 %vm246_vm0, %v1926_v37  ;;  %v228_v40 = vpop.permute.xlu1 %227 }
  0xa4   : > { %v226_v41 = vpop.permute.xlu0 %225  ;;  %2119 = vmatmul.mubr.msk.f32.gmra.mrb[2].mxu0 %vm229_vm1, %v2615_v38 }
  0xa5   : > { %2054 = vmatprep.mubr.msk.f32.mxu1 %vm229_vm1, %v226_v41  ;;  %2121 = vmatprep.mubr.msk.f32.mxu0 %vm229_vm1, %v2620_v39 }
  0xa6   : > { %2055 = vmatmul.mubr.msk.f32.gmra.mrb[6].mxu1 %vm229_vm1, %v228_v40 }
  0xa7   : > { %2059 = vmatprep.mubr.msk.f32.mxu1 %vm229_vm1, %v2453_v5  ;;  %v2637_v44 = vpop.permute.xlu1 %1357  ;;  %v2729_v5 = vld [vmem:[%s2447_s9 + $0x81] sm:$0xff] }
  0xa8   : > { %v2639_v45 = vpop.permute.xlu0 %1355  ;;  %2122 = vmatmul.mubr.msk.f32.gmra.mrb[4].mxu0 %vm229_vm1, %v2630_v42 }
  0xa9   : > { %2124 = vmatprep.mubr.msk.f32.mxu0 %vm229_vm1, %v2635_v43 }
  0xaa   : > { %2060 = vmatmul.mubr.msk.f32.vlgmr.msra.gmra.mrb[0].mxu1 %vm229_vm1, %v2450_v4 }
  0xab   : > { %2072 = vmatpush3.msk.msra.mxu1 %vm246_vm0, %v1852_v24  ;;  %2062 = vmatprep.mubr.msk.f32.mxu1 %vm229_vm1, %v2473_v9  ;;  %v2656_v49 = vpop.permute.xlu1 %1361 }
  0xac   : > { %v2658_v50 = vpop.permute.xlu0 %1359  ;;  %2085 = vmatprep.subr.msk.mxu1 %vm246_vm0, %v1870_v46  ;;  %2125 = vmatmul.mubr.msk.f32.gmra.mrb[6].mxu0 %vm229_vm1, %v2651_v47 }
  0xad   : > { %2129 = vmatprep.mubr.msk.f32.mxu0 %vm229_vm1, %v2450_v4 }
  0xae   : > { %2063 = vmatmul.mubr.msk.f32.gmra.mrb[2].mxu1 %vm229_vm1, %v2483_v11 }
  0xaf   : > { %2065 = vmatprep.mubr.msk.f32.mxu1 %vm229_vm1, %v2493_v13  ;;  %v2669_v52 = vpop.permute.xlu1 %1365 }
  0xb0   : > { %v2671_v53 = vpop.permute.xlu0 %1363  ;;  %2130 = vmatmul.mubr.msk.f32.vlgmr.msra.gmra.mrb[0].mxu0 %vm229_vm1, %v2473_v9 }
  0xb1   : > { %3035 = vst [vmem:[#allocation5_spill] sm:$0xff] %v2671_v53  ;;  %2142 = vmatpush3.msk.msra.mxu0 %vm246_vm0, %v1926_v37  ;;  %2132 = vmatprep.mubr.msk.f32.mxu0 %vm229_vm1, %v2483_v11  ;;  %v2775_v37 = vsel %vm2714_vm4, %v2483_v11, -inf }
  0xb2   : > { %2066 = vmatmul.mubr.msk.f32.gmra.mrb[4].mxu1 %vm229_vm1, %v2490_v12  ;;  %2155 = vmatprep.subr.msk.mxu0 %vm246_vm0, %v1944_v54 }
  0xb3   : > { %2068 = vmatprep.mubr.msk.f32.mxu1 %vm229_vm1, %v2503_v15  ;;  %v2685_v56 = vpop.permute.xlu1 %1369 }
  0xb4   : > { %v2687_v57 = vpop.permute.xlu0 %1367  ;;  %2133 = vmatmul.mubr.msk.f32.gmra.mrb[2].mxu0 %vm229_vm1, %v2493_v13  ;;  %v2787_v13 = vld [vmem:[%s2447_s9 + $0xe1] sm:$0xff] }
  0xb5   : > { %2135 = vmatprep.mubr.msk.f32.mxu0 %vm229_vm1, %v2490_v12 }
  0xb6   : > { %2069 = vmatmul.mubr.msk.f32.gmra.mrb[6].mxu1 %vm229_vm1, %v2500_v14 }
  0xb7   : > { %2073 = vmatprep.mubr.msk.f32.mxu1 %vm229_vm1, %v527_v58  ;;  %v2701_v60 = vpop.permute.xlu1 %874  ;;  %v849_v58 = vsel %vm2714_vm4, %v2480_v10, -inf }
  0xb8   : > { %v2703_v61 = vpop.permute.xlu0 %872  ;;  %2136 = vmatmul.mubr.msk.f32.gmra.mrb[4].mxu0 %vm229_vm1, %v2503_v15 }
  0xb9   : > { %2138 = vmatprep.mubr.msk.f32.mxu0 %vm229_vm1, %v2500_v14 }
  0xba   : > { %2074 = vmatmul.mubr.msk.f32.vlgmr.msra.gmra.mrb[0].mxu1 %vm229_vm1, %v2699_v59 }
  0xbb   : > { %2086 = vmatpush3.msk.msra.mxu1 %vm246_vm0, %v1870_v46  ;;  %2076 = vmatprep.mubr.msk.f32.mxu1 %vm229_vm1, %v2706_v62  ;;  %v2724_v2 = vpop.permute.xlu1 %878 }
  0xbc   : > { %v2726_v3 = vpop.permute.xlu0 %876  ;;  %2169 = vmatprep.subr.msk.mxu1 %vm246_vm0, %v2423_v1  ;;  %2139 = vmatmul.mubr.msk.f32.gmra.mrb[6].mxu0 %vm229_vm1, %v2522_v16 }
  0xbd   : > { %2143 = vmatprep.mubr.msk.f32.mxu0 %vm229_vm1, %v2639_v45 }
  0xbe   : > { %2077 = vmatmul.mubr.msk.f32.gmra.mrb[2].mxu1 %vm229_vm1, %v2722_v0 }
  0xbf   : > { %2079 = vmatprep.mubr.msk.f32.mxu1 %vm229_vm1, %v2729_v5  ;;  %v500_v24 = vpop.permute.xlu1 %499 }
  0xc0   : > { %v498_v9 = vpop.permute.xlu0 %497  ;;  %v521_v29 = vmax.f32 %v2738_v21, %v500_v24  ;;  %2144 = vmatmul.mubr.msk.f32.vlgmr.msra.gmra.mrb[0].mxu0 %vm229_vm1, %v2637_v44  ;;  %v2799_v24 = vsel %vm2714_vm4, %v2490_v12, -inf }
  0xc1   : > { %v520_v4 = vmax.f32 %v2743_v22, %v498_v9  ;;  %2156 = vmatpush3.msk.msra.mxu0 %vm246_vm0, %v1944_v54  ;;  %2146 = vmatprep.mubr.msk.f32.mxu0 %vm229_vm1, %v2658_v50  ;;  %v850_v9 = vsel %vm2714_vm4, %v2532_v18, -inf }
  0xc2   : > { %2080 = vmatmul.mubr.msk.f32.gmra.mrb[4].mxu1 %vm229_vm1, %v2752_v23  ;;  %v687_v40 = vmax.f32 %v521_v29, %v2706_v62  ;;  %v2811_v29 = vsel %vm2714_vm4, %v2503_v15, -inf  ;;  %v2825_v15 = vsel %vm2714_vm4, %v2500_v14, -inf  ;;  %v852_v14 = vsel %vm2714_vm4, %v2542_v20, -inf }
  0xc3   : > { %v686_v41 = vmax.f32 %v520_v4, %v2699_v59  ;;  %2082 = vmatprep.mubr.msk.f32.mxu1 %vm229_vm1, %v2755_v27  ;;  %v504_v46 = vpop.permute.xlu1 %503 }
  0xc4   : > { %v502_v11 = vpop.permute.xlu0 %501  ;;  %v856_v48 = vmax.f32 %v687_v40, %v848_v34  ;;  %v523_v55 = vmax.f32 %v2770_v35, %v504_v46  ;;  %2147 = vmatmul.mubr.msk.f32.gmra.mrb[2].mxu0 %vm229_vm1, %v2656_v49 }
  0xc5   : > { %v855_v51 = vmax.f32 %v686_v41, %v847_v32  ;;  %v522_v54 = vmax.f32 %v2775_v37, %v502_v11  ;;  %2149 = vmatprep.mubr.msk.f32.mxu0 %vm229_vm1, %v2671_v53 }
  0xc6   : > { %2083 = vmatmul.mubr.msk.f32.gmra.mrb[6].mxu1 %vm229_vm1, %v2787_v13  ;;  %v689_v12 = vmax.f32 %v523_v55, %v2729_v5  ;;  %v1022_v34 = vmax.f32 %v856_v48, %v2584_v28  ;;  %v846_v28 = vsel %vm2714_vm4, %v2463_v7, -inf }
  0xc7   : > { %v1021_v4 = vmax.f32 %v855_v51, %v2570_v25  ;;  %v688_v32 = vmax.f32 %v522_v54, %v2722_v0  ;;  %2087 = vmatprep.mubr.msk.f32.mxu1 %vm229_vm1, %v2463_v7  ;;  %v508_v40 = vpop.permute.xlu1 %507 }
  0xc8   : > { %v506_v41 = vpop.permute.xlu0 %505  ;;  %v858_v11 = vmax.f32 %v689_v12, %v850_v9  ;;  %2150 = vmatmul.mubr.msk.f32.gmra.mrb[4].mxu0 %vm229_vm1, %v2669_v52  ;;  %v525_v25 = vmax.f32 %v2811_v29, %v508_v40  ;;  %v1180_v7 = vmax.f32 %v1022_v34, %v2604_v36 }
  0xc9   : > { %v1179_v46 = vmax.f32 %v1021_v4, %v2601_v33  ;;  %v857_v53 = vmax.f32 %v688_v32, %v849_v58  ;;  %v524_v51 = vmax.f32 %v2799_v24, %v506_v41  ;;  %2152 = vmatprep.mubr.msk.f32.mxu0 %vm229_vm1, %v2687_v57  ;;  %v851_v33 = vsel %vm2714_vm4, %v2529_v17, -inf }
  0xca   : > { %2088 = vmatmul.mubr.msk.f32.vlgmr.msra.gmra.mrb[0].mxu1 %vm229_vm1, %v2460_v6  ;;  %v691_v55 = vmax.f32 %v525_v25, %v2755_v27  ;;  %v1024_v4 = vmax.f32 %v858_v11, %v2703_v61 }
  0xcb   : > { %v1023_v48 = vmax.f32 %v857_v53, %v2593_v31  ;;  %2170 = vmatpush3.msk.msra.mxu1 %vm246_vm0, %v2423_v1  ;;  %2090 = vmatprep.mubr.msk.f32.mxu1 %vm229_vm1, %v2470_v8  ;;  %v1346_v6 = vmax.f32 %v1179_v46, %v2738_v21  ;;  %v690_v54 = vmax.f32 %v524_v51, %v2752_v23  ;;  %v496_v58 = vpop.permute.xlu1 %495  ;;  %v853_v8 = vsel %vm2714_vm4, %v2539_v19, -inf }
  0xcc   : > { %v510_v9 = vpop.permute.xlu0 %509  ;;  %v854_v53 = vmax.f32 %v496_v58, %v846_v28  ;;  %2153 = vmatmul.mubr.msk.f32.gmra.mrb[6].mxu0 %vm229_vm1, %v2685_v56  ;;  %v860_v36 = vmax.f32 %v691_v55, %v852_v14  ;;  %v1182_v11 = vmax.f32 %v1024_v4, %v2620_v39 }
  0xcd   : > { %v1181_v31 = vmax.f32 %v1023_v48, %v2615_v38  ;;  %v526_v1 = vmax.f32 %v2825_v15, %v510_v9  ;;  %v859_v21 = vmax.f32 %v690_v54, %v851_v33  ;;  %2157 = vmatprep.mubr.msk.f32.mxu0 %vm229_vm1, %v2699_v59  ;;  %v1512_v38 = vmax.f32 %v1346_v6, %v2637_v44 }
  0xce   : > { %2091 = vmatmul.mubr.msk.f32.gmra.mrb[2].mxu1 %vm229_vm1, %v2480_v10  ;;  %v1020_v12 = vmax.f32 %v854_v53, %v2572_v26  ;;  %v1347_v26 = vmax.f32 %v1180_v7, %v2775_v37 }
  0xcf   : > { %v692_v32 = vmax.f32 %v526_v1, %v2787_v13  ;;  %2093 = vmatprep.mubr.msk.f32.mxu1 %vm229_vm1, %v2532_v18  ;;  %v1348_v34 = vmax.f32 %v1181_v31, %v2770_v35  ;;  %v1025_v40 = vmax.f32 %v859_v21, %v2701_v60  ;;  %v1670_v41 = vmax.f32 %v1512_v38, %v2706_v62 }
  0xd0   : > { %v1178_v10 = vmax.f32 %v1020_v12, %v2591_v30  ;;  %2158 = vmatmul.mubr.msk.f32.vlgmr.msra.gmra.mrb[0].mxu0 %vm229_vm1, %v2706_v62  ;;  %v1026_v18 = vmax.f32 %v860_v36, %v2726_v3  ;;  %v1513_v63 = vmax.f32 %v1347_v26, %v2658_v50 }
  0xd1   : > { %v861_v46 = vmax.f32 %v692_v32, %v853_v8  ;;  %v1514_v44 = vmax.f32 %v1348_v34, %v2656_v49  ;;  %v1183_v35 = vmax.f32 %v1025_v40, %v2630_v42  ;;  %1719 = vrot.lane.b32.xlu1 %v1670_v41, %s2344_s30  ;;  %2160 = vmatprep.mubr.msk.f32.mxu0 %vm229_vm1, %v2722_v0  ;;  %v1344_v42 = vsel %vm2714_vm4, %v2522_v16, -inf }
  0xd2   : > { %2094 = vmatmul.mubr.msk.f32.gmra.mrb[4].mxu1 %vm229_vm1, %v2529_v17  ;;  %v1345_v30 = vmax.f32 %v1178_v10, %v2743_v22  ;;  %v1349_v16 = vmax.f32 %v1182_v11, %v2799_v24  ;;  %v1184_v37 = vmax.f32 %v1026_v18, %v2635_v43  ;;  %v1671_v43 = vmax.f32 %v1513_v63, %v2722_v0 }
  0xd3   : > { %v1027_v62 = vmax.f32 %v861_v46, %v2724_v2  ;;  %2096 = vmatprep.mubr.msk.f32.mxu1 %vm229_vm1, %v2542_v20  ;;  %v1672_v39 = vmax.f32 %v1514_v44, %v2729_v5  ;;  %v1350_v49 = vmax.f32 %v1183_v35, %v2811_v29 }
  0xd4   : > { %2161 = vmatmul.mubr.msk.f32.gmra.mrb[2].mxu0 %vm229_vm1, %v2729_v5  ;;  %v1511_v22 = vmax.f32 %v1345_v30, %v2639_v45 }
  0xd5   : > { %v1185_v17 = vmax.f32 %v1027_v62, %v2651_v47  ;;  %1723 = vrot.lane.b32.xlu1 %v1672_v39, %s2344_s30  ;;  %v1516_v20 = vmax.f32 %v1350_v49, %v2669_v52  ;;  %2163 = vmatprep.mubr.msk.f32.mxu0 %vm229_vm1, %v2752_v23 }
  0xd6   : > { %2097 = vmatmul.mubr.msk.f32.gmra.mrb[6].mxu1 %vm229_vm1, %v2539_v19  ;;  %v1669_v47 = vmax.f32 %v1511_v22, %v2699_v59  ;;  %v1943_v19 = vld [vmem:[%s2447_s9 + $0x101] sm:$0xff]  ;;  %s1961_s9 = sshll.u32 %s2388_s16, 10  ;;  %s2986_s16 = scalar_lea.sflag [#allocation3], %s164_s4 }
  0xd7   : > { %2107 = vmatprep.mubr.msk.f32.mxu1 %vm229_vm1, %v2703_v61  ;;  %v1352_v45 = vmax.f32 %v1185_v17, %v1344_v42  ;;  %v1674_v5 = vmax.f32 %v1516_v20, %v2755_v27  ;;  %v3038_v59 = vld [vmem:[#allocation5_spill] sm:$0xff]  ;;  %s2972_s19 = scalar_lea.hbm %s3031_s3, %s1961_s9 }
  0xd8   : > { %1717 = vrot.lane.b32.xlu0 %v1669_v47, %s2344_s30  ;;  %2164 = vmatmul.mubr.msk.f32.gmra.mrb[4].mxu0 %vm229_vm1, %v2755_v27  ;;  %v1515_v61 = vmax.f32 %v1349_v16, %v3038_v59  ;;  %v1351_v27 = vmax.f32 %v1184_v37, %v2825_v15 }
  0xd9   : > { %v1518_v50 = vmax.f32 %v1352_v45, %v2685_v56  ;;  %1727 = vrot.lane.b32.xlu1 %v1674_v5, %s2344_s30  ;;  %2166 = vmatprep.mubr.msk.f32.mxu0 %vm229_vm1, %v2787_v13 }
  0xda   : > { %2108 = vmatmul.mubr.msk.f32.vlgmr.msra.gmra.mrb[4].mxu1 %vm229_vm1, %v2701_v60  ;;  %v1673_v56 = vmax.f32 %v1515_v61, %v2752_v23  ;;  %v1517_v60 = vmax.f32 %v1351_v27, %v2687_v57 }
  0xdb   : > { %2110 = vmatprep.mubr.msk.f32.mxu1 %vm229_vm1, %v2726_v3  ;;  %v1676_v52 = vmax.f32 %v1518_v50, %v1943_v19 }
  0xdc   : > { %1721 = vrot.lane.b32.xlu0 %v1671_v43, %s2344_s30  ;;  %2167 = vmatmul.mubr.msk.f32.gmra.mrb[6].mxu0 %vm229_vm1, %v1943_v19  ;;  %v1675_v0 = vmax.f32 %v1517_v60, %v2787_v13 }
  0xdd   : > { %1731 = vrot.lane.b32.xlu1 %v1676_v52, %s2344_s30 }
  0xde   : > { %2111 = vmatmul.mubr.msk.f32.gmra.mrb[6].mxu1 %vm229_vm1, %v2724_v2  ;;  %v1954_v2 = vld [vmem:[%s3030_s2] ss:$0 sm:$0xff] }
  0xe0   : > { %1725 = vrot.lane.b32.xlu0 %v1673_v56, %s2344_s30 }
  0xe4   : > { %1729 = vrot.lane.b32.xlu0 %v1675_v0, %s2344_s30 }
 0x143   : > { %v1720_v51 = vpop.permute.xlu1 %1719 }
 0x147   : > { %v1724_v9 = vpop.permute.xlu1 %1723 }
 0x14a   : > { %v1718_v28 = vpop.permute.xlu0 %1717 }
 0x14b   : > { %v1728_v26 = vpop.permute.xlu1 %1727 }
 0x14e   : > { %v1722_v31 = vpop.permute.xlu0 %1721 }
 0x14f   : > { %v1732_v20 = vpop.permute.xlu1 %1731 }
 0x152   : > { %v1726_v30 = vpop.permute.xlu0 %1725 }
 0x156   : > { %v1730_v63 = vpop.permute.xlu0 %1729 }
 0x19d   : > { %v2089_v3 = vpop.f32.mrb[0].mxu1 }
 0x19e   : > { %v797_v24 = vpop.f32.mrb[1].mxu1 }
 0x1a1   : > { %v2092_v29 = vpop.f32.mrb[2].mxu1 }
 0x1a2   : > { %v807_v15 = vpop.f32.mrb[3].mxu1 }
 0x1a3   : > { %v2159_v25 = vpop.f32.mrb[0].mxu0 }
 0x1a4   : > { %v2171_v57 = vadd.f32 %v2159_v25, %v2089_v3  ;;  %v1622_v23 = vpop.f32.mrb[1].mxu0 }
 0x1a5   : > { %v2172_v33 = vadd.f32 %v1622_v23, %v797_v24 }
 0x1a6   : > { %v1685_v13 = vadd.f32 %v2171_v57, %v1954_v2 }
 0x1a7   : > { %v1684_v14 = vadd.f32 %v2172_v33, %v1954_v2  ;;  %v2162_v48 = vpop.f32.mrb[2].mxu0 }
 0x1a8   : > { %v1693_v6 = vmax.f32 %v1685_v13, 0.0  ;;  %v2173_v7 = vadd.f32 %v2162_v48, %v2092_v29  ;;  %v1632_v55 = vpop.f32.mrb[3].mxu0 }
 0x1a9   : > { %v1692_v54 = vmax.f32 %v1684_v14, 0.0  ;;  %v2174_v58 = vadd.f32 %v1632_v55, %v807_v15 }
 0x1aa   : > { %1702 = vst.msk [vmem:[%s2941_s8 + $0x8] sm:$0xff] %vm1700_vm5, %v1693_v6  ;;  %v1687_v4 = vadd.f32 %v2173_v7, %v1954_v2 }
 0x1ab   : > { %1743 = vst.msk [vmem:[%s2941_s8 + $0x8] sm:$0xff] %vm1741_vm6, %v1720_v51  ;;  %v1686_v53 = vadd.f32 %v2174_v58, %v1954_v2  ;;  %v2165_v1 = vpop.f32.mrb[4].mxu0 }
 0x1ac   : > { %1701 = vst.msk [vmem:[%s2941_s8] sm:$0xff] %vm1700_vm5, %v1692_v54  ;;  %v1695_v8 = vmax.f32 %v1687_v4, 0.0  ;;  %v1642_v21 = vpop.f32.mrb[5].mxu0 }
 0x1ad   : > { %1742 = vst.msk [vmem:[%s2941_s8] sm:$0xff] %vm1741_vm6, %v1718_v28  ;;  %v2109_v36 = vpop.f32.mrb[4].mxu1  ;;  %v1694_v38 = vmax.f32 %v1686_v53, 0.0 }
 0x1ae   : > { %v2175_v12 = vadd.f32 %v2165_v1, %v2109_v36  ;;  %v985_v32 = vpop.f32.mrb[5].mxu1  ;;  %1704 = vst.msk [vmem:[%s2941_s8 + $0x18] sm:$0xff] %vm1700_vm5, %v1695_v8 }
 0x1af   : > { %v2176_v34 = vadd.f32 %v1642_v21, %v985_v32  ;;  %1745 = vst.msk [vmem:[%s2941_s8 + $0x18] sm:$0xff] %vm1741_vm6, %v1724_v9  ;;  %v2168_v41 = vpop.f32.mrb[6].mxu0 }
 0x1b0   : > { %1703 = vst.msk [vmem:[%s2941_s8 + $0x10] sm:$0xff] %vm1700_vm5, %v1694_v38  ;;  %v1689_v40 = vadd.f32 %v2175_v12, %v1954_v2  ;;  %v1652_v44 = vpop.f32.mrb[7].mxu0 }
 0x1b1   : > { %1744 = vst.msk [vmem:[%s2941_s8 + $0x10] sm:$0xff] %vm1741_vm6, %v1722_v31  ;;  %v1688_v10 = vadd.f32 %v2176_v34, %v1954_v2  ;;  %v2112_v46 = vpop.f32.mrb[6].mxu1 }
 0x1b2   : > { %v1697_v11 = vmax.f32 %v1689_v40, 0.0  ;;  %v2177_v18 = vadd.f32 %v2168_v41, %v2112_v46  ;;  %v995_v35 = vpop.f32.mrb[7].mxu1 }
 0x1b3   : > { %v1696_v62 = vmax.f32 %v1688_v10, 0.0  ;;  %v2178_v39 = vadd.f32 %v1652_v44, %v995_v35 }
 0x1b4   : > { %1706 = vst.msk [vmem:[%s2941_s8 + $0x28] sm:$0xff] %vm1700_vm5, %v1697_v11  ;;  %v1691_v42 = vadd.f32 %v2177_v18, %v1954_v2 }
 0x1b5   : > { %1747 = vst.msk [vmem:[%s2941_s8 + $0x28] sm:$0xff] %vm1741_vm6, %v1728_v26  ;;  %v1690_v49 = vadd.f32 %v2178_v39, %v1954_v2 }
 0x1b6   : > { %1705 = vst.msk [vmem:[%s2941_s8 + $0x20] sm:$0xff] %vm1700_vm5, %v1696_v62  ;;  %v1699_v17 = vmax.f32 %v1691_v42, 0.0 }
 0x1b7   : > { %1746 = vst.msk [vmem:[%s2941_s8 + $0x20] sm:$0xff] %vm1741_vm6, %v1726_v30  ;;  %v1698_v22 = vmax.f32 %v1690_v49, 0.0 }
 0x1b8   : > { %1708 = vst.msk [vmem:[%s2941_s8 + $0x38] sm:$0xff] %vm1700_vm5, %v1699_v17 }
 0x1b9   : > { %1749 = vst.msk [vmem:[%s2941_s8 + $0x38] sm:$0xff] %vm1741_vm6, %v1732_v20 }
 0x1ba   : > { %1707 = vst.msk [vmem:[%s2941_s8 + $0x30] sm:$0xff] %vm1700_vm5, %v1698_v22 }
 0x1bb   : > { %1748 = vst.msk [vmem:[%s2941_s8 + $0x30] sm:$0xff] %vm1741_vm6, %v1730_v63 }
 0x1bc   : > { %2291 = shalt.err (!%p2288_p3)
}
 0x1bd   : > { %s2292_s27 = scalar_lea.hbm %s2972_s19, 1024  ;;  %s2296_s4 = scalar_lea.hbm %s3031_s3, 2048 }
 0x1be   : > { %p2293_p4 = scmp.ne.s32.totalorder %s2972_s19, %s2292_s27  ;;  %p2297_p9 = scmp.lt.u32.totalorder %s2972_s19, %s3031_s3 }
 0x1bf   : > { %p2298_p10 = scmp.lt.u32.totalorder %s2296_s4, %s2292_s27  ;;  %p2300_p12 = scmp.lt.u32.totalorder %s2292_s27, %s2972_s19 }
 0x1c0   : > { %p2294_p7 = pnand %p2293_p4, %p2405_p5 }
 0x1c1   : > { %p2299_p11 = por %p2298_p10, %p2297_p9 }
 0x1c2   : > { %p2295_p8 = pneg %p2294_p7 }
 0x1c3   : > { %p2301_p13 = por %p2300_p12, %p2299_p11 }
 0x1c5   : > { %p2302_p0 = pnand %p2301_p13, %p2295_p8 }
 0x1c7   : > { %2305 = shalt.err (!%p2302_p0)
}
 0x1c8   : > { %s2346_s7 = smov 128  }
 0x1c9   : > { %2235 = dma.vmem_to_hbm [thread:$0]  (%p2405_p5), %s2976_s10, 1024, %s2972_s19, %s2986_s16, %s2346_s7, %s2346_s7, %s2344_s30  }
 0x1ca PF: > { %p2241_p1 = scmp.ge.s32.totalorder %s2340_s15, 2  ;;  %s1779_s8 = sand.u32 1, %s2328_s12  }
 0x1cb   : > { %s1780_s9 = scalar_lea.sflag [#allocation3], %s1779_s8 }
 0x1cc   : > { %p2238_p2 = pnand %p2241_p1, %p2409_p6 }
 0x1ce   : > { %2323 = dma.done.wait (!%p2238_p2), %s1780_s9, 1024  }
 0x1cf   : > { %2325 = vsyncadd (!%p2238_p2), %s1780_s9, 4294966272  ;;  %p13_p3 = scmp.ge.s32.totalorder %s2392_s18, 4   ;;  %s3039_s12 = smov %s2332_s13 }
 0x1d0   : > { %s3040_s13 = smov %s2336_s14  ;;  %s3041_s14 = smov %s2403_s21 }
 0x1d1   : > { %s3042_s15 = smov %s2392_s18  ;;  %15 = sbr.rel (!%p13_p3) target bundleno = 3 (0x3), region = 77 }
 0x1d8   :  { %1785 = vsyncpa [#allocation3], 1 }
 0x1d9   :  { %1787 = vsyncpa [#allocation3 + $0x1], 1 }

</bundles_post_ra>
